<compile_context>
chip_gen: v5e
topology: v5e:2x2
jax: 0.10.0
libtpu: 0.0.40
codegen_flags: <defaults>
</compile_context>

<pallas_src>
import jax
import jax.numpy as jnp
from jax import lax
from jax.experimental import pallas as pl
from jax.experimental.pallas import tpu as pltpu

BN_EPS = 1e-5


def _round_up(v, m):
    return (v + m - 1) // m * m


# ---------------------------------------------------------------------------
# Pass 1: conv-as-matmul (MXU) + fused per-channel sum / sumsq partials.
# ---------------------------------------------------------------------------
def conv_stats_kernel(patches_ref, w_ref, y_ref, stats_ref):
    # patches_ref: (TM, KKC)        bf16
    # w_ref:       (KKC, COUT_PAD)  bf16
    # y_ref:       (TM, COUT_PAD)   f32   raw conv output tile
    # stats_ref:   (2, COUT_PAD)    f32   row 0 = sum(y), row 1 = sum(y*y) for this tile
    y = jnp.dot(patches_ref[...], w_ref[...], preferred_element_type=jnp.float32)
    y_ref[...] = y
    stats_ref[0:1, :] = jnp.sum(y, axis=0, keepdims=True)
    stats_ref[1:2, :] = jnp.sum(y * y, axis=0, keepdims=True)


# ---------------------------------------------------------------------------
# Pass 2: per-channel affine (folded BN) + SiLU.
# ---------------------------------------------------------------------------
def bn_silu_kernel(y_ref, scale_ref, shift_ref, o_ref):
    # y_ref: (TM, COUT_PAD) f32, scale/shift: (1, COUT_PAD) f32
    z = y_ref[...] * scale_ref[...] + shift_ref[...]
    o_ref[...] = z * jax.nn.sigmoid(z)


def _im2col_nhwc(x_nhwc, k):
    # x_nhwc: (N, H, W, Cin) -> (N*H*W, k*k*Cin), 'same' padding, stride 1. Pure glue.
    n, h, w, c = x_nhwc.shape
    pad = k // 2
    xp = jnp.pad(x_nhwc, ((0, 0), (pad, pad), (pad, pad), (0, 0)))
    cols = []
    for kh in range(k):
        for kw in range(k):
            cols.append(xp[:, kh:kh + h, kw:kw + w, :])          # (N, H, W, Cin)
    patches = jnp.stack(cols, axis=3)                            # (N, H, W, k*k, Cin)
    return patches.reshape(n * h * w, k * k * c)


def conv_wrapper_forward(x_nchw, conv_w, conv_b, gamma, beta, k=3, tm=256):
    # x_nchw: (N, Cin, H, W);  conv_w: (Cout, Cin, k, k)  (PyTorch layouts)
    del conv_b  # cancels exactly under training-mode BatchNorm (mean subtraction)
    n, cin, h, w = x_nchw.shape
    cout = conv_w.shape[0]
    m = n * h * w
    kkc = k * k * cin

    cout_pad = _round_up(cout, 128)          # lane-dense output
    m_pad = _round_up(m, tm)                 # whole number of row tiles
    grid_m = m_pad // tm

    # --- wrapper-side glue (layout + im2col), bf16 for the MXU ---------------
    x_nhwc = jnp.transpose(x_nchw, (0, 2, 3, 1)).astype(jnp.bfloat16)
    patches = _im2col_nhwc(x_nhwc, k)                            # (M, KKC) bf16
    if m_pad != m:
        patches = jnp.pad(patches, ((0, m_pad - m), (0, 0)))

    w_mat = jnp.transpose(conv_w, (2, 3, 1, 0)).reshape(kkc, cout)
    w_mat = w_mat.astype(jnp.bfloat16)
    if cout_pad != cout:
        w_mat = jnp.pad(w_mat, ((0, 0), (0, cout_pad - cout)))

    cparams = pltpu.CompilerParams(
        dimension_semantics=("parallel",),
        vmem_limit_bytes=64 * 1024 * 1024,
    )

    # --- pass 1: conv + fused BN partial sums --------------------------------
    y, stats = pl.pallas_call(
        conv_stats_kernel,
        out_shape=(
            jax.ShapeDtypeStruct((m_pad, cout_pad), jnp.float32),
            jax.ShapeDtypeStruct((grid_m, 2, cout_pad), jnp.float32),
        ),
        grid_spec=pltpu.PrefetchScalarGridSpec(
            num_scalar_prefetch=0,
            grid=(grid_m,),
            in_specs=[
                pl.BlockSpec((tm, kkc), lambda i: (i, 0)),
                pl.BlockSpec((kkc, cout_pad), lambda i: (0, 0)),
            ],
            out_specs=(
                pl.BlockSpec((tm, cout_pad), lambda i: (i, 0)),
                pl.BlockSpec((None, 2, cout_pad), lambda i: (i, 0, 0)),
            ),
        ),
        compiler_params=cparams,
    )(patches, w_mat)

    # --- tiny JAX glue: global stats -> folded scale/shift -------------------
    # Zero-padded rows contribute exactly 0 to both sums, so divide by real M.
    ch_sum = jnp.sum(stats[:, 0, :], axis=0)                     # (COUT_PAD,)
    ch_sumsq = jnp.sum(stats[:, 1, :], axis=0)                   # (COUT_PAD,)
    mean = ch_sum / m
    var = jnp.maximum(ch_sumsq / m - mean * mean, 0.0)           # biased variance

    gamma_pad = jnp.pad(gamma.astype(jnp.float32), (0, cout_pad - cout))
    beta_pad = jnp.pad(beta.astype(jnp.float32), (0, cout_pad - cout))
    scale = gamma_pad * lax.rsqrt(var + BN_EPS)
    shift = beta_pad - mean * scale

    # --- pass 2: normalize + SiLU --------------------------------------------
    out_flat = pl.pallas_call(
        bn_silu_kernel,
        out_shape=jax.ShapeDtypeStruct((m_pad, cout_pad), jnp.float32),
        grid_spec=pltpu.PrefetchScalarGridSpec(
            num_scalar_prefetch=0,
            grid=(grid_m,),
            in_specs=[
                pl.BlockSpec((tm, cout_pad), lambda i: (i, 0)),
                pl.BlockSpec((1, cout_pad), lambda i: (0, 0)),
                pl.BlockSpec((1, cout_pad), lambda i: (0, 0)),
            ],
            out_specs=pl.BlockSpec((tm, cout_pad), lambda i: (i, 0)),
        ),
        compiler_params=cparams,
    )(y, scale.reshape(1, cout_pad), shift.reshape(1, cout_pad))

    out_nhwc = out_flat[:m, :cout].reshape(n, h, w, cout)
    return jnp.transpose(out_nhwc, (0, 3, 1, 2))                 # back to NCHW


def reference_forward(x_nchw, conv_w, conv_b, gamma, beta):
    # Pure-JAX reference: conv(+bias) + training-mode BN + SiLU, on the same
    # bf16-quantized conv inputs the kernel feeds the MXU (f32 accumulation).
    xq = x_nchw.astype(jnp.bfloat16).astype(jnp.float32)
    wq = conv_w.astype(jnp.bfloat16).astype(jnp.float32)
    y = lax.conv_general_dilated(
        xq, wq, window_strides=(1, 1), padding="SAME",
        dimension_numbers=("NCHW", "OIHW", "NCHW"),
    ) + conv_b[None, :, None, None]
    mean = jnp.mean(y, axis=(0, 2, 3), keepdims=True)
    var = jnp.mean((y - mean) ** 2, axis=(0, 2, 3), keepdims=True)
    z = (y - mean) * lax.rsqrt(var + BN_EPS)
    z = z * gamma[None, :, None, None] + beta[None, :, None, None]
    return z * jax.nn.sigmoid(z)


if __name__ == "__main__":
    key = jax.random.PRNGKey(0)
    k_x, k_w, k_b, k_g, k_be = jax.random.split(key, 5)

    N, Cin, Cout, H, W, K = 2, 4, 8, 16, 16, 3

    x = jax.random.normal(k_x, (N, Cin, H, W), dtype=jnp.float32)
    conv_w = jax.random.normal(k_w, (Cout, Cin, K, K), dtype=jnp.float32) * 0.1
    conv_b = jax.random.normal(k_b, (Cout,), dtype=jnp.float32) * 0.1
    gamma = 1.0 + 0.1 * jax.random.normal(k_g, (Cout,), dtype=jnp.float32)
    beta = 0.1 * jax.random.normal(k_be, (Cout,), dtype=jnp.float32)

    out = conv_wrapper_forward(x, conv_w, conv_b, gamma, beta, k=K)
    out = jax.block_until_ready(out)

    ref = jax.block_until_ready(reference_forward(x, conv_w, conv_b, gamma, beta))
    assert out.shape == (N, Cout, H, W)
    assert jnp.allclose(out, ref, atol=2e-3, rtol=2e-3), "mismatch vs reference"

    print("KERNEL_OK")
</pallas_src>

<mosaic_0001>
module attributes {stable_mosaic.version = 11 : i64} {
  func.func @conv_stats_kernel(%arg0: i32, %arg1: memref<256x36xbf16, #tpu.memory_space<vmem>>, %arg2: memref<36x128xbf16, #tpu.memory_space<vmem>>, %arg3: memref<256x128xf32, #tpu.memory_space<vmem>>, %arg4: memref<1x2x128xf32, #tpu.memory_space<vmem>>) attributes {dimension_semantics = [#tpu.dimension_semantics<parallel>], iteration_bounds = array<i64: 2>, scalar_prefetch = 0 : i64, scratch_operands = 0 : i64, tpu.core_type = #tpu.core_type<tc>, window_params = [{transform_indices = @transform_0, window_bounds = array<i64: 256, 36>}, {pipeline_mode = #tpu.pipeline_mode<synchronous>, transform_indices = @transform_1, window_bounds = array<i64: 36, 128>}, {transform_indices = @transform_2, window_bounds = array<i64: 256, 128>}, {transform_indices = @transform_3, window_bounds = array<i64: 1, 2, 128>}]} {
    %c0 = arith.constant 0 : index
    %c0_0 = arith.constant 0 : index
    %0 = vector.load %arg1[%c0, %c0_0] : memref<256x36xbf16, #tpu.memory_space<vmem>>, vector<256x36xbf16>
    %c0_1 = arith.constant 0 : index
    %c0_2 = arith.constant 0 : index
    %1 = vector.load %arg2[%c0_1, %c0_2] : memref<36x128xbf16, #tpu.memory_space<vmem>>, vector<36x128xbf16>
    %cst = arith.constant dense<0.000000e+00> : vector<256x128xf32>
    %2 = tpu.matmul %0, %1, %cst {dimension_numbers = #tpu.dot_dimension_numbers<[1], [0], [0], [1], [0, 0, 1, 1], [], []>} : vector<256x36xbf16>, vector<36x128xbf16>, vector<256x128xf32> -> vector<256x128xf32>
    %c0_3 = arith.constant 0 : index
    %c0_4 = arith.constant 0 : index
    %3 = vector.load %arg3[%c0_3, %c0_4] : memref<256x128xf32, #tpu.memory_space<vmem>>, vector<256x128xf32>
    tpu.vector_store %arg3[%c0_3, %c0_4], %2 {strides = array<i32>} : memref<256x128xf32, #tpu.memory_space<vmem>>, vector<256x128xf32>,
    %cst_5 = arith.constant dense<0.000000e+00> : vector<128xf32>
    %4 = vector.multi_reduction <add>, %2, %cst_5 [0] : vector<256x128xf32> to vector<128xf32>
    %5 = vector.shape_cast %4 : vector<128xf32> to vector<1x128xf32>
    %c0_6 = arith.constant 0 : index
    %c0_7 = arith.constant 0 : index
    %c0_8 = arith.constant 0 : index
    %6 = vector.load %arg4[%c0_6, %c0_7, %c0_8] : memref<1x2x128xf32, #tpu.memory_space<vmem>>, vector<1x1x128xf32>
    %7 = vector.shape_cast %6 : vector<1x1x128xf32> to vector<1x128xf32>
    %8 = vector.shape_cast %5 : vector<1x128xf32> to vector<1x1x128xf32>
    tpu.vector_store %arg4[%c0_6, %c0_7, %c0_8], %8 {strides = array<i32>} : memref<1x2x128xf32, #tpu.memory_space<vmem>>, vector<1x1x128xf32>,
    %9 = arith.mulf %2, %2 : vector<256x128xf32>
    %cst_9 = arith.constant dense<0.000000e+00> : vector<128xf32>
    %10 = vector.multi_reduction <add>, %9, %cst_9 [0] : vector<256x128xf32> to vector<128xf32>
    %11 = vector.shape_cast %10 : vector<128xf32> to vector<1x128xf32>
    %c0_10 = arith.constant 0 : index
    %c1 = arith.constant 1 : index
    %c0_11 = arith.constant 0 : index
    %12 = vector.load %arg4[%c0_10, %c1, %c0_11] : memref<1x2x128xf32, #tpu.memory_space<vmem>>, vector<1x1x128xf32>
    %13 = vector.shape_cast %12 : vector<1x1x128xf32> to vector<1x128xf32>
    %14 = vector.shape_cast %11 : vector<1x128xf32> to vector<1x1x128xf32>
    tpu.vector_store %arg4[%c0_10, %c1, %c0_11], %14 {strides = array<i32>} : memref<1x2x128xf32, #tpu.memory_space<vmem>>, vector<1x1x128xf32>,
    return
  }
  func.func @transform_0(%arg0: i32) -> (i32, i32) {
    %c0_i32 = arith.constant 0 : i32
    %c0_i32_0 = arith.constant 0 : i32
    return %arg0, %c0_i32 : i32, i32
  }
  func.func @transform_1(%arg0: i32) -> (i32, i32) {
    %c0_i32 = arith.constant 0 : i32
    %c0_i32_0 = arith.constant 0 : i32
    %c0_i32_1 = arith.constant 0 : i32
    return %c0_i32, %c0_i32_0 : i32, i32
  }
  func.func @transform_2(%arg0: i32) -> (i32, i32) {
    %c0_i32 = arith.constant 0 : i32
    %c0_i32_0 = arith.constant 0 : i32
    return %arg0, %c0_i32 : i32, i32
  }
  func.func @transform_3(%arg0: i32) -> (i32, i32, i32) {
    %c0_i32 = arith.constant 0 : i32
    %c0_i32_0 = arith.constant 0 : i32
    %c0_i32_1 = arith.constant 0 : i32
    return %arg0, %c0_i32, %c0_i32_0 : i32, i32, i32
  }
}

</mosaic_0001>

<bundles_post_ra>
// kernel: tpu_custom_call.1
= control target key start
LH: loop header
LB: loop body
LE: loop exit
PB: predicated region body
PF: predicated region fallthrough
CT: control target
= control target key end

     0   :  { %9 = vsyncpa [#allocation3], 0  ;;  %s1344_s0 = inlined_call_operand.vmem [shape: bf16[512,36], index: 0, kind: input, shape index: {}]   ;;  %s1345_s1 = inlined_call_operand.vmem [shape: bf16[36,128], index: 1, kind: input, shape index: {}]   ;;  %s1346_s2 = inlined_call_operand.hbm [shape: f32[512,128], index: 2, kind: output, shape index: {0}]   ;;  %s1347_s3 = inlined_call_operand.hbm [shape: f32[2,2,128], index: 3, kind: output, shape index: {1}]  }
   0x1   :  { %11 = vsyncpa [#allocation3 + $0x1], 0 }
   0x2   :  { %12 = vsyncpa [#allocation5], 0 }
   0x3   :  { %14 = vsyncpa [#allocation5 + $0x1], 0  ;;  %s1023_s12 = smov 0   ;;  %s1025_s13 = smov 0  }
   0x4   :  { %s1027_s14 = smov 0   ;;  %s1029_s15 = smov 0  }
   0x5 LB: > { %s1044_s16 = sadd.s32 4294967295, %s999_s15   ;;  %s728_s17 = sadd.s32 4294967294, %s999_s15   ;;  %s999_s15 = sphi %s1029_s15, %s1353_s15   ;;  %s995_s14 = sphi %s1027_s14, %s1352_s14   ;;  %s991_s13 = sphi %s1025_s13, %s1351_s13   ;;  %s987_s12 = sphi %s1023_s12, %s1350_s12  }
   0x6   : > { %s1048_s18 = sadd.s32 1, %s999_s15   ;;  %s74_s19 = sadd.s32 1, %s995_s14 }
   0x7   : > { %s71_s20 = ssub.s32 %s999_s15, %s1048_s18  ;;  %p84_p0 = scmp.ne.s32.totalorder %s995_s14, %s991_s13 }
   0x8   : > { %p72_p1 = scmp.eq.s32.totalorder %s71_s20, 0  ;;  %p85_p2 = scmp.eq.s32.totalorder %s1044_s16, 1 }
   0x9   : > { %p90_p3 = scmp.ne.s32.totalorder %s991_s13, %s987_s12  ;;  %p91_p4 = scmp.eq.s32.totalorder %s728_s17, 1 }
   0xa   : > { %s1059_s21 = scalar_select %p72_p1, %s995_s14, %s74_s19  }
   0xb   : > { %p1061_p5 = por %p85_p2, %p84_p0  ;;  %p1065_p6 = por %p91_p4, %p90_p3 }
   0xc   : > { %p731_p7 = scmp.ge.s32.totalorder %s999_s15, 1  ;;  %p147_p8 = scmp.lt.s32.totalorder %s999_s15, 3 }
   0xe   : > { %p148_p9 = pnand %p731_p7, %p147_p8 }
   0xf   : > { %s734_s26 = sshll.u32 (!%p148_p9), %s1044_s16, 5  ;;  %s1119_s8 = sand.u32 (!%p148_p9), 1, %s991_s13  }
  0x10   : > { %151 = sbr.rel (%p148_p9) target bundleno = 287 (0x11f), region = 28  ;;  %p177_p10 = scmp.lt.s32.totalorder (!%p148_p9), %s734_s26, 63 }
  0x11   : > { %s732_s9 = sshll.u32 (!%p148_p9), %s1119_s8, 8  ;;  %s849_s11 = sshll.u32 (!%p148_p9), %s1044_s16, 8 }
  0x12   : > { %s1124_s10 = scalar_lea.vmem (!%p148_p9), [#allocation2], %s732_s9  ;;  %s615_s20 = scalar_lea.hbm (!%p148_p9), %s1346_s2, %s849_s11 }
  0x13   : > { %s616_s24 = sshll.u32 (!%p148_p9), %s1124_s10, 4  ;;  %s618_s25 = sshll.u32 (!%p148_p9), %s615_s20, 4  ;;  %s1231_s24 = int_to_ptr.vmem [resolvable:$true] %s616_s24  ;;  %s1233_s25 = int_to_ptr.hbm [resolvable:$true] %s618_s25 }
  0x14   : > { %s919_s27 = sshra.s32 (!%p148_p9), %s1233_s25, 4  ;;  %s925_s4 = scalar_lea.hbm (!%p148_p9), %s1346_s2, 512  ;;  %s920_s27 = int_to_ptr.hbm [resolvable:$true] %s919_s27 }
  0x15   : > { %v220_v0 = vld [vmem:[%s1345_s1 + $0x10] sm:$0x3]  ;;  %vm365_vm0 = vcmask 1041408   ;;  %s1355_s26 = smov (!%p177_p10, %s734_s26), 63  ;;  %v848_v4 = vld [vmem:[%s1345_s1 + $0x8] sm:$0xff]  ;;  %v847_v5 = vld [vmem:[%s1345_s1] sm:$0xff]  ;;  %p926_p0 = scmp.lt.s32.totalorder %s920_s27, %s1346_s2 }
  0x16   : > { %v310_v1 = vunpack.c.l.b16 %v220_v0  ;;  %s735_s29 = sshll.u32 %s1355_s26, 2  ;;  %vm316_vm1 = vcmask 293888   ;;  %s599_s26 = scalar_lea.sflag [#allocation3], %s1119_s8 }
  0x17   : > { %s1084_s7 = scalar_lea.vmem %s1344_s0, %s735_s29  ;;  %s921_s28 = scalar_lea.hbm %s920_s27, 256 }
  0x18   : > { %v313_v2 = vpack.c.b16 %v310_v1, %v310_v1  ;;  %v831_v6 = vld [vmem:[%s1084_s7] sm:$0xff]  ;;  %v832_v10 = vld [vmem:[%s1084_s7 + $0x8] sm:$0xff]  ;;  %v833_v14 = vld [vmem:[%s1084_s7 + $0x10] sm:$0xff]  ;;  %p922_p11 = scmp.ne.s32.totalorder %s920_s27, %s921_s28  ;;  %p927_p1 = scmp.lt.s32.totalorder %s925_s4, %s921_s28 }
  0x19   : > { %v835_v7 = vld [vmem:[%s1084_s7 + $0x20] sm:$0xff]  ;;  %v836_v11 = vld [vmem:[%s1084_s7 + $0x28] sm:$0xff]  ;;  %v837_v15 = vld [vmem:[%s1084_s7 + $0x30] sm:$0xff] }
  0x1a   : > { %v367_v3 = vsel %vm365_vm0, %v313_v2, 0  ;;  %v839_v8 = vld [vmem:[%s1084_s7 + $0x40] sm:$0xff]  ;;  %v840_v12 = vld [vmem:[%s1084_s7 + $0x48] sm:$0xff]  ;;  %v841_v16 = vld [vmem:[%s1084_s7 + $0x50] sm:$0xff]  ;;  %p923_p12 = pnand %p922_p11, %p1061_p5  ;;  %p928_p2 = por %p927_p1, %p926_p0 }
  0x1b   : > { %374 = vmatpush.bf16.msra.mxu0 %v367_v3  ;;  %850 = vmatpush.bf16.msra.mxu1 %v367_v3  ;;  %v843_v9 = vld [vmem:[%s1084_s7 + $0x60] sm:$0xff]  ;;  %v844_v13 = vld [vmem:[%s1084_s7 + $0x68] sm:$0xff]  ;;  %v845_v17 = vld [vmem:[%s1084_s7 + $0x70] sm:$0xff] }
  0x1c   : > { %851 = vmatpush.bf16.msra.mxu2 %v367_v3  ;;  %852 = vmatpush.bf16.msra.mxu3 %v367_v3  ;;  %v834_v18 = vld [vmem:[%s1084_s7 + $0x18] sm:$0xff]  ;;  %p924_p13 = pneg %p923_p12 }
  0x1d   : > { %v838_v19 = vld [vmem:[%s1084_s7 + $0x38] sm:$0xff] }
  0x1e   : > { %v842_v20 = vld [vmem:[%s1084_s7 + $0x58] sm:$0xff]  ;;  %p929_p3 = pnand %p928_p2, %p924_p13 }
  0x1f   : > { %375 = vmatpush.bf16.msra.mxu0 %v848_v4  ;;  %853 = vmatpush.bf16.msra.mxu1 %v848_v4  ;;  %v846_v21 = vld [vmem:[%s1084_s7 + $0x78] sm:$0xff] }
  0x20   : > { %854 = vmatpush.bf16.msra.mxu2 %v848_v4  ;;  %855 = vmatpush.bf16.msra.mxu3 %v848_v4 }
  0x23   : > { %376 = vmatpush.bf16.msra.mxu0 %v847_v5  ;;  %856 = vmatpush.bf16.msra.mxu1 %v847_v5 }
  0x24   : > { %857 = vmatpush.bf16.msra.mxu2 %v847_v5  ;;  %858 = vmatpush.bf16.msra.mxu3 %v847_v5 }
  0x26   : > { %808 = vmatmul.msk.bf16.vlgmr.msra.gmra.mxu0 %vm316_vm1, %v831_v6  ;;  %812 = vmatmul.msk.bf16.vlgmr.msra.gmra.mxu1 %vm316_vm1, %v835_v7 }
  0x27   : > { %816 = vmatmul.msk.bf16.vlgmr.msra.gmra.mxu2 %vm316_vm1, %v839_v8  ;;  %820 = vmatmul.msk.bf16.vlgmr.msra.gmra.mxu3 %vm316_vm1, %v843_v9 }
  0x36   : > { %809 = vmatmul.msk.bf16.gmra.mxu0 %vm316_vm1, %v832_v10  ;;  %813 = vmatmul.msk.bf16.gmra.mxu1 %vm316_vm1, %v836_v11 }
  0x37   : > { %817 = vmatmul.msk.bf16.gmra.mxu2 %vm316_vm1, %v840_v12  ;;  %821 = vmatmul.msk.bf16.gmra.mxu3 %vm316_vm1, %v844_v13 }
  0x46   : > { %810 = vmatmul.msk.bf16.gmra.mxu0 %vm316_vm1, %v833_v14  ;;  %814 = vmatmul.msk.bf16.gmra.mxu1 %vm316_vm1, %v837_v15 }
  0x47   : > { %818 = vmatmul.msk.bf16.gmra.mxu2 %vm316_vm1, %v841_v16  ;;  %822 = vmatmul.msk.bf16.gmra.mxu3 %vm316_vm1, %v845_v17 }
  0x56   : > { %811 = vmatmul.msk.bf16.gmra.mxu0 %vm316_vm1, %v834_v18  ;;  %815 = vmatmul.msk.bf16.gmra.mxu1 %vm316_vm1, %v838_v19 }
  0x57   : > { %819 = vmatmul.msk.bf16.gmra.mxu2 %vm316_vm1, %v842_v20  ;;  %823 = vmatmul.msk.bf16.gmra.mxu3 %vm316_vm1, %v846_v21 }
  0xa3   : > { %v378_v22 = vpop.f32.mrf.mxu0  ;;  %v1122_v23 = vpop.f32.mrf.mxu1 }
  0xa4   : > { %458 = vst [vmem:[%s1124_s10] sm:$0xff] %v378_v22  ;;  %v528_v45 = vmul.f32 %v378_v22, %v378_v22  ;;  %v536_v9 = vmul.f32 %v1122_v23, %v1122_v23 }
  0xa5   : > { %466 = vst [vmem:[%s1124_s10 + $0x40] sm:$0xff] %v1122_v23 }
  0xaa   : > { %v1129_v24 = vpop.f32.mrf.mxu2  ;;  %v1136_v27 = vpop.f32.mrf.mxu3 }
  0xab   : > { %v380_v25 = vpop.f32.mrf.mxu0  ;;  %v1131_v26 = vpop.f32.mrf.mxu1  ;;  %474 = vst [vmem:[%s1124_s10 + $0x80] sm:$0xff] %v1129_v24 }
  0xac   : > { %459 = vst [vmem:[%s1124_s10 + $0x8] sm:$0xff] %v380_v25  ;;  %v529_v44 = vmul.f32 %v380_v25, %v380_v25  ;;  %v490_v46 = vadd.f32 %v380_v25, %v378_v22  ;;  %v537_v12 = vmul.f32 %v1131_v26, %v1131_v26 }
  0xad   : > { %467 = vst [vmem:[%s1124_s10 + $0x48] sm:$0xff] %v1131_v26 }
  0xae   : > { %482 = vst [vmem:[%s1124_s10 + $0xc0] sm:$0xff] %v1136_v27  ;;  %v560_v48 = vadd.f32 %v529_v44, %v528_v45 }
  0xb2   : > { %v1142_v28 = vpop.f32.mrf.mxu2  ;;  %v1149_v31 = vpop.f32.mrf.mxu3 }
  0xb3   : > { %v383_v29 = vpop.f32.mrf.mxu0  ;;  %v1144_v30 = vpop.f32.mrf.mxu1  ;;  %475 = vst [vmem:[%s1124_s10 + $0x88] sm:$0xff] %v1142_v28 }
  0xb4   : > { %460 = vst [vmem:[%s1124_s10 + $0x10] sm:$0xff] %v383_v29  ;;  %v530_v47 = vmul.f32 %v383_v29, %v383_v29  ;;  %v491_v49 = vadd.f32 %v490_v46, %v383_v29  ;;  %v538_v15 = vmul.f32 %v1144_v30, %v1144_v30 }
  0xb5   : > { %468 = vst [vmem:[%s1124_s10 + $0x50] sm:$0xff] %v1144_v30 }
  0xb6   : > { %483 = vst [vmem:[%s1124_s10 + $0xc8] sm:$0xff] %v1149_v31  ;;  %v561_v54 = vadd.f32 %v560_v48, %v530_v47 }
  0xba   : > { %v1155_v32 = vpop.f32.mrf.mxu2  ;;  %v1162_v35 = vpop.f32.mrf.mxu3 }
  0xbb   : > { %v385_v33 = vpop.f32.mrf.mxu0  ;;  %v1157_v34 = vpop.f32.mrf.mxu1  ;;  %476 = vst [vmem:[%s1124_s10 + $0x90] sm:$0xff] %v1155_v32 }
  0xbc   : > { %461 = vst [vmem:[%s1124_s10 + $0x18] sm:$0xff] %v385_v33  ;;  %v531_v50 = vmul.f32 %v385_v33, %v385_v33  ;;  %v492_v55 = vadd.f32 %v491_v49, %v385_v33  ;;  %v539_v19 = vmul.f32 %v1157_v34, %v1157_v34 }
  0xbd   : > { %469 = vst [vmem:[%s1124_s10 + $0x58] sm:$0xff] %v1157_v34 }
  0xbe   : > { %484 = vst [vmem:[%s1124_s10 + $0xd0] sm:$0xff] %v1162_v35  ;;  %v562_v58 = vadd.f32 %v561_v54, %v531_v50 }
  0xc2   : > { %v1168_v36 = vpop.f32.mrf.mxu2  ;;  %v1175_v39 = vpop.f32.mrf.mxu3 }
  0xc3   : > { %v388_v37 = vpop.f32.mrf.mxu0  ;;  %v1170_v38 = vpop.f32.mrf.mxu1  ;;  %477 = vst [vmem:[%s1124_s10 + $0x98] sm:$0xff] %v1168_v36 }
  0xc4   : > { %462 = vst [vmem:[%s1124_s10 + $0x20] sm:$0xff] %v388_v37  ;;  %v532_v56 = vmul.f32 %v388_v37, %v388_v37  ;;  %v493_v59 = vadd.f32 %v492_v55, %v388_v37 }
  0xc5   : > { %470 = vst [vmem:[%s1124_s10 + $0x60] sm:$0xff] %v1170_v38 }
  0xc6   : > { %485 = vst [vmem:[%s1124_s10 + $0xd8] sm:$0xff] %v1175_v39  ;;  %v563_v61 = vadd.f32 %v562_v58, %v532_v56 }
  0xca   : > { %v1181_v40 = vpop.f32.mrf.mxu2  ;;  %v1188_v43 = vpop.f32.mrf.mxu3 }
  0xcb   : > { %v390_v41 = vpop.f32.mrf.mxu0  ;;  %v1183_v42 = vpop.f32.mrf.mxu1  ;;  %478 = vst [vmem:[%s1124_s10 + $0xa0] sm:$0xff] %v1181_v40 }
  0xcc   : > { %463 = vst [vmem:[%s1124_s10 + $0x28] sm:$0xff] %v390_v41  ;;  %v533_v60 = vmul.f32 %v390_v41, %v390_v41  ;;  %v494_v62 = vadd.f32 %v493_v59, %v390_v41 }
  0xcd   : > { %471 = vst [vmem:[%s1124_s10 + $0x68] sm:$0xff] %v1183_v42 }
  0xce   : > { %486 = vst [vmem:[%s1124_s10 + $0xe0] sm:$0xff] %v1188_v43  ;;  %v564_v0 = vadd.f32 %v563_v61, %v533_v60 }
  0xd2   : > { %v1194_v51 = vpop.f32.mrf.mxu2  ;;  %v1201_v57 = vpop.f32.mrf.mxu3 }
  0xd3   : > { %v393_v52 = vpop.f32.mrf.mxu0  ;;  %v1196_v53 = vpop.f32.mrf.mxu1  ;;  %479 = vst [vmem:[%s1124_s10 + $0xa8] sm:$0xff] %v1194_v51 }
  0xd4   : > { %464 = vst [vmem:[%s1124_s10 + $0x30] sm:$0xff] %v393_v52  ;;  %v534_v63 = vmul.f32 %v393_v52, %v393_v52  ;;  %v495_v1 = vadd.f32 %v494_v62, %v393_v52 }
  0xd5   : > { %472 = vst [vmem:[%s1124_s10 + $0x70] sm:$0xff] %v1196_v53 }
  0xd6   : > { %487 = vst [vmem:[%s1124_s10 + $0xe8] sm:$0xff] %v1201_v57  ;;  %v565_v5 = vadd.f32 %v564_v0, %v534_v63 }
  0xda   : > { %v1208_v2 = vpop.f32.mrf.mxu2  ;;  %v1213_v8 = vpop.f32.mrf.mxu3 }
  0xdb   : > { %v395_v3 = vpop.f32.mrf.mxu0  ;;  %v415_v4 = vpop.f32.mrf.mxu1  ;;  %480 = vst [vmem:[%s1124_s10 + $0xb0] sm:$0xff] %v1208_v2 }
  0xdc   : > { %465 = vst [vmem:[%s1124_s10 + $0x38] sm:$0xff] %v395_v3  ;;  %v496_v6 = vadd.f32 %v495_v1, %v395_v3  ;;  %v535_v7 = vmul.f32 %v395_v3, %v395_v3 }
  0xdd   : > { %473 = vst [vmem:[%s1124_s10 + $0x78] sm:$0xff] %v415_v4 }
  0xde   : > { %v497_v10 = vadd.f32 %v496_v6, %v1122_v23  ;;  %v566_v11 = vadd.f32 %v565_v5, %v535_v7  ;;  %488 = vst [vmem:[%s1124_s10 + $0xf0] sm:$0xff] %v1213_v8  ;;  %v540_v23 = vmul.f32 %v1170_v38, %v1170_v38 }
  0xe0   : > { %v498_v13 = vadd.f32 %v497_v10, %v1131_v26  ;;  %v567_v14 = vadd.f32 %v566_v11, %v536_v9 }
  0xe2   : > { %v499_v16 = vadd.f32 %v498_v13, %v1144_v30  ;;  %v568_v17 = vadd.f32 %v567_v14, %v537_v12  ;;  %v435_v18 = vpop.f32.mrf.mxu2  ;;  %v1239_v22 = vpop.f32.mrf.mxu3 }
  0xe3   : > { %481 = vst [vmem:[%s1124_s10 + $0xb8] sm:$0xff] %v435_v18 }
  0xe4   : > { %v569_v20 = vadd.f32 %v568_v17, %v538_v15  ;;  %v500_v21 = vadd.f32 %v499_v16, %v1157_v34  ;;  %489 = vst [vmem:[%s1124_s10 + $0xf8] sm:$0xff] %v1239_v22 }
  0xe6   : > { %v501_v25 = vadd.f32 %v500_v21, %v1170_v38  ;;  %v570_v26 = vadd.f32 %v569_v20, %v539_v19 }
  0xe7   : > { %932 = shalt.err (!%p929_p3)
}
  0xe8   : > { %s1001_s7 = smov 128   ;;  %s1002_s9 = smov 8   ;;  %v541_v29 = vmul.f32 %v1183_v42, %v1183_v42  ;;  %v502_v30 = vadd.f32 %v501_v25, %v1183_v42  ;;  %v571_v33 = vadd.f32 %v570_v26, %v540_v23  ;;  %v542_v37 = vmul.f32 %v1196_v53, %v1196_v53 }
  0xe9   : > { %859 = dma.vmem_to_hbm [thread:$0]  (%p1061_p5), %s1231_s24, 4096, %s1233_s25, %s599_s26, %s1001_s7, %s1001_s7, %s1002_s9   ;;  %v543_v45 = vmul.f32 %v415_v4, %v415_v4  ;;  %v544_v46 = vmul.f32 %v1129_v24, %v1129_v24  ;;  %v545_v49 = vmul.f32 %v1142_v28, %v1142_v28  ;;  %v546_v52 = vmul.f32 %v1155_v32, %v1155_v32 }
  0xea   : > { %v503_v34 = vadd.f32 %v502_v30, %v1196_v53  ;;  %v572_v38 = vadd.f32 %v571_v33, %v541_v29  ;;  %v547_v55 = vmul.f32 %v1168_v36, %v1168_v36  ;;  %v549_v61 = vmul.f32 %v1194_v51, %v1194_v51  ;;  %s733_s10 = sshll.u32 %s1119_s8, 1  ;;  %s828_s11 = sshll.u32 %s1044_s16, 1 }
  0xeb   : > { %v550_v0 = vmul.f32 %v1208_v2, %v1208_v2  ;;  %v551_v3 = vmul.f32 %v435_v18, %v435_v18  ;;  %v553_v6 = vmul.f32 %v1149_v31, %v1149_v31  ;;  %v554_v9 = vmul.f32 %v1162_v35, %v1162_v35  ;;  %s631_s20 = scalar_lea.hbm %s1347_s3, %s828_s11  ;;  %s175_s24 = scalar_lea.vmem [#allocation4], %s733_s10 }
  0xec   : > { %v573_v41 = vadd.f32 %v572_v38, %v542_v37  ;;  %v504_v44 = vadd.f32 %v503_v34, %v415_v4  ;;  %v552_v4 = vmul.f32 %v1136_v27, %v1136_v27  ;;  %v555_v11 = vmul.f32 %v1175_v39, %v1175_v39  ;;  %s633_s25 = sshll.u32 %s175_s24, 4  ;;  %s635_s26 = sshll.u32 %s631_s20, 4  ;;  %s634_s25 = int_to_ptr.vmem [resolvable:$true] %s633_s25  ;;  %s636_s26 = int_to_ptr.hbm [resolvable:$true] %s635_s26 }
  0xed   : > { %s604_s16 = scalar_lea.sflag [#allocation5], %s1119_s8  ;;  %s947_s27 = sshra.s32 %s636_s26, 4  ;;  %s948_s27 = int_to_ptr.hbm [resolvable:$true] %s947_s27 }
  0xee   : > { %v505_v47 = vadd.f32 %v504_v44, %v1129_v24  ;;  %v574_v48 = vadd.f32 %v573_v41, %v543_v45  ;;  %v548_v24 = vmul.f32 %v1181_v40, %v1181_v40  ;;  %s949_s28 = scalar_lea.hbm %s948_s27, 2  ;;  %s953_s4 = scalar_lea.hbm %s1347_s3, 4 }
  0xef   : > { %p950_p4 = scmp.ne.s32.totalorder %s948_s27, %s949_s28  ;;  %p954_p9 = scmp.lt.s32.totalorder %s948_s27, %s1347_s3 }
  0xf0   : > { %v506_v42 = vadd.f32 %v505_v47, %v1142_v28  ;;  %v575_v50 = vadd.f32 %v574_v48, %v544_v46  ;;  %p955_p10 = scmp.lt.s32.totalorder %s953_s4, %s949_s28 }
  0xf1   : > { %p951_p7 = pnand %p950_p4, %p1061_p5 }
  0xf2   : > { %v507_v53 = vadd.f32 %v506_v42, %v1155_v32  ;;  %v576_v54 = vadd.f32 %v575_v50, %v545_v49  ;;  %p956_p11 = por %p955_p10, %p954_p9 }
  0xf3   : > { %p952_p8 = pneg %p951_p7 }
  0xf4   : > { %v577_v56 = vadd.f32 %v576_v54, %v546_v52  ;;  %v508_v58 = vadd.f32 %v507_v53, %v1168_v36 }
  0xf5   : > { %p957_p12 = pnand %p956_p11, %p952_p8 }
  0xf6   : > { %v509_v59 = vadd.f32 %v508_v58, %v1181_v40  ;;  %v578_v60 = vadd.f32 %v577_v56, %v547_v55 }
  0xf8   : > { %v510_v28 = vadd.f32 %v509_v59, %v1194_v51  ;;  %v579_v62 = vadd.f32 %v578_v60, %v548_v24 }
  0xfa   : > { %v580_v32 = vadd.f32 %v579_v62, %v549_v61  ;;  %v511_v63 = vadd.f32 %v510_v28, %v1208_v2 }
  0xfc   : > { %v581_v1 = vadd.f32 %v580_v32, %v550_v0  ;;  %v512_v36 = vadd.f32 %v511_v63, %v435_v18 }
  0xfe   : > { %v513_v40 = vadd.f32 %v512_v36, %v1136_v27  ;;  %v582_v5 = vadd.f32 %v581_v1, %v551_v3  ;;  %v556_v27 = vmul.f32 %v1188_v43, %v1188_v43 }
 0x100   : > { %v514_v51 = vadd.f32 %v513_v40, %v1149_v31  ;;  %v583_v7 = vadd.f32 %v582_v5, %v552_v4 }
 0x102   : > { %v515_v2 = vadd.f32 %v514_v51, %v1162_v35  ;;  %v584_v10 = vadd.f32 %v583_v7, %v553_v6  ;;  %v557_v35 = vmul.f32 %v1201_v57, %v1201_v57 }
 0x104   : > { %v585_v12 = vadd.f32 %v584_v10, %v554_v9  ;;  %v516_v13 = vadd.f32 %v515_v2, %v1175_v39  ;;  %v558_v39 = vmul.f32 %v1213_v8, %v1213_v8 }
 0x106   : > { %v517_v14 = vadd.f32 %v516_v13, %v1188_v43  ;;  %v586_v31 = vadd.f32 %v585_v12, %v555_v11  ;;  %v559_v43 = vmul.f32 %v1239_v22, %v1239_v22 }
 0x108   : > { %v518_v15 = vadd.f32 %v517_v14, %v1201_v57  ;;  %v587_v16 = vadd.f32 %v586_v31, %v556_v27 }
 0x10a   : > { %v588_v17 = vadd.f32 %v587_v16, %v557_v35  ;;  %v519_v18 = vadd.f32 %v518_v15, %v1213_v8 }
 0x10c   : > { %v589_v19 = vadd.f32 %v588_v17, %v558_v39  ;;  %v520_v20 = vadd.f32 %v519_v18, %v1239_v22 }
 0x10e   : > { %v521_v21 = vrot.slane %v520_v20, 4  ;;  %v590_v23 = vadd.f32 %v589_v19, %v559_v43 }
 0x110   : > { %v522_v25 = vadd.f32 %v521_v21, %v520_v20  ;;  %v591_v26 = vrot.slane %v590_v23, 4 }
 0x112   : > { %v523_v57 = vrot.slane %v522_v25, 2  ;;  %v592_v29 = vadd.f32 %v591_v26, %v590_v23 }
 0x114   : > { %v524_v30 = vadd.f32 %v523_v57, %v522_v25  ;;  %v593_v33 = vrot.slane %v592_v29, 2 }
 0x116   : > { %v525_v8 = vrot.slane %v524_v30, 1  ;;  %v594_v34 = vadd.f32 %v593_v33, %v592_v29 }
 0x118   : > { %v526_v22 = vadd.f32 %v525_v8, %v524_v30  ;;  %v595_v37 = vrot.slane %v594_v34, 1 }
 0x11a   : > { %527 = vst [vmem:[%s175_s24] sm:$0x1] %v526_v22  ;;  %v596_v38 = vadd.f32 %v595_v37, %v594_v34 }
 0x11c   : > { %597 = vst [vmem:[%s175_s24 + $0x1] sm:$0x1] %v596_v38 }
 0x11d   : > { %960 = shalt.err (!%p957_p12)
}
 0x11e   : > { %860 = dma.vmem_to_hbm [thread:$0]  (%p1061_p5), %s634_s25, 32, %s636_s26, %s604_s16  }
 0x11f PF: > { %p870_p13 = scmp.ge.s32.totalorder %s999_s15, 2  ;;  %s647_s8 = sand.u32 1, %s987_s12  }
 0x120   : > { %s648_s7 = scalar_lea.sflag [#allocation3], %s647_s8 }
 0x121   : > { %p864_p0 = pnand %p870_p13, %p1065_p6 }
 0x123   : > { %p865_p1 = pneg %p864_p0 }
 0x125   : > { %978 = dma.done.wait (%p865_p1), %s648_s7, 4096  }
 0x126   : > { %980 = vsyncadd (%p865_p1), %s648_s7, 4294963200  ;;  %s658_s9 = scalar_lea.sflag [#allocation5], %s647_s8 }
 0x127   : > { %982 = dma.done.wait (%p865_p1), %s658_s9, 32  }
 0x128   : > { %984 = vsyncadd (%p865_p1), %s658_s9, 4294967264  ;;  %p17_p5 = scmp.ge.s32.totalorder %s1048_s18, 4   ;;  %s1350_s12 = smov %s991_s13 }
 0x129   : > { %s1351_s13 = smov %s995_s14  ;;  %s1352_s14 = smov %s1059_s21 }
 0x12a   : > { %s1353_s15 = smov %s1048_s18  ;;  %19 = sbr.rel (!%p17_p5) target bundleno = 5 (0x5), region = 80 }
 0x12f   :  { %664 = vsyncpa [#allocation3], 1 }
 0x130   :  { %666 = vsyncpa [#allocation3 + $0x1], 1 }
 0x131   :  { %667 = vsyncpa [#allocation5], 1 }
 0x132   :  { %669 = vsyncpa [#allocation5 + $0x1], 1 }

</bundles_post_ra>
